<compile_context>
chip_gen: v7x
topology: tpu7x:2x2x1
jax: 0.10.0
libtpu: 0.0.40
codegen_flags: <defaults>
</compile_context>

<pallas_src>
import math
from functools import lru_cache

import jax
import jax.numpy as jnp
from jax.experimental import pallas as pl
from jax.experimental.pallas import tpu as pltpu
from jax.scipy.special import erfinv

SQRT2 = math.sqrt(2.0)

_ROW_TILE = 512       # sublane tile target (multiple of 8)
_LANE_TILE = 2048     # lane tile target (multiple of 128)
_ROW_TILE_1D = 512    # row tile for the (N, C) 1-D path


@lru_cache(maxsize=1)
def _vmem_limit_bytes() -> int:
    """Generation-aware VMEM budget (conservative on v7x's 64 MiB per TC)."""
    cap = 128 * 1024 * 1024
    try:
        cap = int(pltpu.get_tpu_info().vmem_capacity_bytes)
    except Exception:
        pass
    if cap <= 64 * 1024 * 1024:       # v7x: 64 MiB physical per TC
        return 48 * 1024 * 1024
    return 64 * 1024 * 1024            # v5e / v6e: 128 MiB physical


# ----------------------------------------------------------------------------
# Parameter ("buffer") construction — deterministic, mirrors __init__.
# ----------------------------------------------------------------------------
def make_mp_fourier_params(num_channels: int, bandwidth: float = 1.0, eps: float = 1e-3):
    lin = jnp.linspace(0.0, 1.0 - eps, num_channels, dtype=jnp.float32)
    freqs = (jnp.pi * erfinv(lin) * bandwidth).astype(jnp.float32)
    phases = (jnp.pi / 2.0) * ((jnp.arange(num_channels) % 2) == 0).astype(jnp.float32)
    return freqs, phases


# ----------------------------------------------------------------------------
# Single generic kernel: out = cos(x * f + p) * sqrt(2), broadcast by shape.
# ----------------------------------------------------------------------------
def _mp_fourier_kernel(x_ref, f_ref, p_ref, o_ref):
    x = x_ref[...].astype(jnp.float32)
    f = f_ref[...].astype(jnp.float32)
    p = p_ref[...].astype(jnp.float32)
    # One mul + add + cos + scale per element; sqrt(2) folded into the same
    # expression (minimal VALU ops in case the cos lowering is VALU-bound).
    o_ref[...] = (jnp.cos(x * f + p) * SQRT2).astype(o_ref.dtype)


# ----------------------------------------------------------------------------
# Tiling helpers.
# ----------------------------------------------------------------------------
def _round_up(x: int, m: int) -> int:
    return ((x + m - 1) // m) * m


def _pick_tile(dim: int, target: int) -> int:
    # Full-dim block is always legal; otherwise use the (8/128-aligned) target.
    return dim if dim <= target else target


def _split_for_two_cores(R: int, L: int, tr: int, tl: int):
    """If the whole problem fits in one block, split one axis into >=2 blocks
    (keeping (8,128) divisibility) so both v7x TensorCores get work."""
    if pl.cdiv(R, tr) * pl.cdiv(L, tl) > 1:
        return tr, tl
    # Prefer putting the extra blocks on the leading (row) axis.
    if R > 8:
        tr2 = _round_up(max(pl.cdiv(R, 2), 1), 8)
        if tr2 < R:
            return tr2, tl
    if L > 128:
        tl2 = _round_up(max(pl.cdiv(L, 2), 1), 128)
        if tl2 < L:
            return tr, tl2
    return tr, tl


# ----------------------------------------------------------------------------
# Generic 2-D launcher: x2 (R, L); freqs/phases either a (R, 1) column or a
# (1, L) row (selected by f_is_row).
# ----------------------------------------------------------------------------
def _mp_fourier_call_2d(x2, f2, p2, out_dtype, *, f_is_row: bool):
    R, L = x2.shape
    tr = _pick_tile(R, _ROW_TILE)
    tl = _pick_tile(L, _LANE_TILE)
    tr, tl = _split_for_two_cores(R, L, tr, tl)
    grid = (pl.cdiv(R, tr), pl.cdiv(L, tl))

    if f_is_row:
        # Resident (1, L) row: broadcast down the sublane axis inside the kernel.
        fp_spec = pl.BlockSpec((1, tl), lambda i, j: (0, j))
    else:
        # (R, 1) column: broadcast across lanes inside the kernel.
        # NOTE: keep the lane axis (j) innermost — the (i, 0) block index is
        # constant across consecutive j steps, so Pallas does not re-DMA the
        # column.  Do NOT reorder the grid to (L-tiles, R-tiles).
        fp_spec = pl.BlockSpec((tr, 1), lambda i, j: (i, 0))

    return pl.pallas_call(
        _mp_fourier_kernel,
        out_shape=jax.ShapeDtypeStruct((R, L), out_dtype),
        grid=grid,
        in_specs=[
            pl.BlockSpec((tr, tl), lambda i, j: (i, j)),
            fp_spec,
            fp_spec,
        ],
        out_specs=pl.BlockSpec((tr, tl), lambda i, j: (i, j)),
        compiler_params=pltpu.CompilerParams(
            dimension_semantics=("parallel", "parallel"),
            vmem_limit_bytes=_vmem_limit_bytes(),
        ),
    )(x2, f2, p2)


# ----------------------------------------------------------------------------
# 1-D (timestep) path: single pass emitting (N, C) directly (no transpose).
# ----------------------------------------------------------------------------
def _mp_fourier_1d(x, freqs, phases, out_dtype):
    N = x.shape[0]
    C = freqs.shape[0]
    tn = _pick_tile(N, _ROW_TILE_1D)
    grid = (pl.cdiv(N, tn),)
    return pl.pallas_call(
        _mp_fourier_kernel,
        out_shape=jax.ShapeDtypeStruct((N, C), out_dtype),
        grid=grid,
        in_specs=[
            pl.BlockSpec((tn, 1), lambda i: (i, 0)),
            pl.BlockSpec((1, C), lambda i: (0, 0)),
            pl.BlockSpec((1, C), lambda i: (0, 0)),
        ],
        out_specs=pl.BlockSpec((tn, C), lambda i: (i, 0)),
        compiler_params=pltpu.CompilerParams(
            dimension_semantics=("parallel",),
            vmem_limit_bytes=_vmem_limit_bytes(),
        ),
    )(
        x.reshape(N, 1),
        freqs.astype(jnp.float32).reshape(1, C),
        phases.astype(jnp.float32).reshape(1, C),
    )


# ----------------------------------------------------------------------------
# Public wrapper.
# ----------------------------------------------------------------------------
def mp_fourier(x: jax.Array, freqs: jax.Array, phases: jax.Array) -> jax.Array:
    C = freqs.shape[0]
    f32 = jnp.float32

    if x.ndim == 1:
        return _mp_fourier_1d(x, freqs, phases, x.dtype)

    assert x.ndim == 4, "MPFourier expects 1-D or 4-D input"
    B, Cx, H, W = x.shape
    assert Cx == C
    HW = H * W

    if HW >= 128:
        # Lane-dense view (B*C, H*W) with per-row freq/phase columns.
        R, L = B * C, HW
        x2 = x.reshape(R, L)  # contiguous NCHW -> free view (a transposed input
        #                       would force an XLA copy here — not wrong, just slower)
        f2 = jnp.broadcast_to(freqs.astype(f32)[None, :], (B, C)).reshape(R, 1)
        p2 = jnp.broadcast_to(phases.astype(f32)[None, :], (B, C)).reshape(R, 1)
        out2 = _mp_fourier_call_2d(x2, f2, p2, x.dtype, f_is_row=False)
    else:
        # Small spatial (late-UNet stages): flatten to (B, C*H*W) so the output
        # lane axis stays dense; freqs/phases become a tiny resident (1, C*H*W) row.
        R, L = B, C * HW
        x2 = x.reshape(R, L)
        f2 = jnp.broadcast_to(freqs.astype(f32)[:, None], (C, HW)).reshape(1, L)
        p2 = jnp.broadcast_to(phases.astype(f32)[:, None], (C, HW)).reshape(1, L)
        out2 = _mp_fourier_call_2d(x2, f2, p2, x.dtype, f_is_row=True)

    return out2.reshape(B, C, H, W)


# ----------------------------------------------------------------------------
# Pure-JAX reference (for correctness check).
# ----------------------------------------------------------------------------
def mp_fourier_ref(x, freqs, phases):
    xf = x.astype(jnp.float32)
    f = freqs.astype(jnp.float32)
    p = phases.astype(jnp.float32)
    if x.ndim == 1:
        y = jnp.outer(xf, f) + p
    else:
        y = xf * f.reshape(1, -1, 1, 1) + p.reshape(1, -1, 1, 1)
    return (jnp.cos(y) * SQRT2).astype(x.dtype)


if __name__ == "__main__":
    key = jax.random.PRNGKey(0)
    k1, k2, k3, k4, k5 = jax.random.split(key, 5)

    # --- 4-D NCHW, f32, H*W >= 128 path (batch=2, channels=4, spatial=16) ---
    C = 4
    freqs, phases = make_mp_fourier_params(C, bandwidth=1.0, eps=1e-3)
    x4 = jax.random.normal(k1, (2, C, 16, 16), dtype=jnp.float32)
    out4 = jax.block_until_ready(mp_fourier(x4, freqs, phases))
    ref4 = mp_fourier_ref(x4, freqs, phases)
    assert out4.shape == x4.shape and out4.dtype == x4.dtype
    assert jnp.allclose(out4, ref4, atol=1e-5, rtol=1e-5)

    # --- 4-D NCHW, f32, H*W < 128 path (late-UNet small spatial, 8x8) ---
    x4s = jax.random.normal(k2, (2, C, 8, 8), dtype=jnp.float32)
    out4s = jax.block_until_ready(mp_fourier(x4s, freqs, phases))
    ref4s = mp_fourier_ref(x4s, freqs, phases)
    assert out4s.shape == x4s.shape and out4s.dtype == x4s.dtype
    assert jnp.allclose(out4s, ref4s, atol=1e-5, rtol=1e-5)

    # --- 4-D NCHW, bf16, larger spatial to exercise the lane grid ---
    xb = jax.random.normal(k3, (1, C, 64, 64), dtype=jnp.bfloat16)
    outb = jax.block_until_ready(mp_fourier(xb, freqs, phases))
    refb = mp_fourier_ref(xb, freqs, phases)
    assert outb.shape == xb.shape and outb.dtype == xb.dtype
    assert jnp.allclose(outb.astype(jnp.float32), refb.astype(jnp.float32),
                        atol=1e-2, rtol=1e-2)

    # --- 1-D timestep path, small C (< 128), single pass, no transpose ---
    x1 = jax.random.normal(k4, (8,), dtype=jnp.float32)
    out1 = jax.block_until_ready(mp_fourier(x1, freqs, phases))
    ref1 = mp_fourier_ref(x1, freqs, phases)
    assert out1.shape == (8, C) and out1.dtype == x1.dtype
    assert jnp.allclose(out1, ref1, atol=1e-5, rtol=1e-5)

    # --- 1-D timestep path, C = 128 (typical EDM2 width) ---
    C_big = 128
    freqs_b, phases_b = make_mp_fourier_params(C_big, bandwidth=1.0, eps=1e-3)
    x1b = jax.random.normal(k5, (16,), dtype=jnp.float32)
    out1b = jax.block_until_ready(mp_fourier(x1b, freqs_b, phases_b))
    ref1b = mp_fourier_ref(x1b, freqs_b, phases_b)
    assert out1b.shape == (16, C_big) and out1b.dtype == x1b.dtype
    assert jnp.allclose(out1b, ref1b, atol=1e-5, rtol=1e-5)

    print("KERNEL_OK")
</pallas_src>

<mosaic_0001>
module attributes {stable_mosaic.version = 11 : i64} {
  func.func @_mp_fourier_kernel(%arg0: i32, %arg1: i32, %arg2: memref<8x128xf32, #tpu.memory_space<vmem>>, %arg3: memref<8x1xf32, #tpu.memory_space<vmem>>, %arg4: memref<8x1xf32, #tpu.memory_space<vmem>>, %arg5: memref<8x128xf32, #tpu.memory_space<vmem>>) attributes {dimension_semantics = [#tpu.dimension_semantics<parallel>, #tpu.dimension_semantics<parallel>], iteration_bounds = array<i64: 1, 2>, scalar_prefetch = 0 : i64, scratch_operands = 0 : i64, tpu.core_type = #tpu.core_type<tc>, window_params = [{transform_indices = @transform_0, window_bounds = array<i64: 8, 128>}, {transform_indices = @transform_1, window_bounds = array<i64: 8, 1>}, {transform_indices = @transform_2, window_bounds = array<i64: 8, 1>}, {transform_indices = @transform_3, window_bounds = array<i64: 8, 128>}]} {
    %c0 = arith.constant 0 : index
    %c0_0 = arith.constant 0 : index
    %0 = vector.load %arg2[%c0, %c0_0] : memref<8x128xf32, #tpu.memory_space<vmem>>, vector<8x128xf32>
    %c0_1 = arith.constant 0 : index
    %c0_2 = arith.constant 0 : index
    %1 = vector.load %arg3[%c0_1, %c0_2] : memref<8x1xf32, #tpu.memory_space<vmem>>, vector<8x1xf32>
    %c0_3 = arith.constant 0 : index
    %c0_4 = arith.constant 0 : index
    %2 = vector.load %arg4[%c0_3, %c0_4] : memref<8x1xf32, #tpu.memory_space<vmem>>, vector<8x1xf32>
    %3 = vector.broadcast %1 : vector<8x1xf32> to vector<8x128xf32>
    %4 = arith.mulf %0, %3 : vector<8x128xf32>
    %5 = vector.broadcast %2 : vector<8x1xf32> to vector<8x128xf32>
    %6 = arith.addf %4, %5 : vector<8x128xf32>
    %7 = math.cos %6 : vector<8x128xf32>
    %cst = arith.constant 1.41421354 : f32
    %8 = vector.broadcast %cst : f32 to vector<8x128xf32>
    %9 = arith.mulf %7, %8 : vector<8x128xf32>
    %c0_5 = arith.constant 0 : index
    %c0_6 = arith.constant 0 : index
    %10 = vector.load %arg5[%c0_5, %c0_6] : memref<8x128xf32, #tpu.memory_space<vmem>>, vector<8x128xf32>
    tpu.vector_store %arg5[%c0_5, %c0_6], %9 {strides = array<i32>} : memref<8x128xf32, #tpu.memory_space<vmem>>, vector<8x128xf32>,
    return
  }
  func.func @transform_0(%arg0: i32, %arg1: i32) -> (i32, i32) {
    %c0_i32 = arith.constant 0 : i32
    return %arg0, %arg1 : i32, i32
  }
  func.func @transform_1(%arg0: i32, %arg1: i32) -> (i32, i32) {
    %c0_i32 = arith.constant 0 : i32
    %c0_i32_0 = arith.constant 0 : i32
    return %arg0, %c0_i32 : i32, i32
  }
  func.func @transform_2(%arg0: i32, %arg1: i32) -> (i32, i32) {
    %c0_i32 = arith.constant 0 : i32
    %c0_i32_0 = arith.constant 0 : i32
    return %arg0, %c0_i32 : i32, i32
  }
  func.func @transform_3(%arg0: i32, %arg1: i32) -> (i32, i32) {
    %c0_i32 = arith.constant 0 : i32
    return %arg0, %arg1 : i32, i32
  }
}

</mosaic_0001>

<bundles_post_ra>
// kernel: tpu_custom_call.1
= control target key start
LH: loop header
LB: loop body
LE: loop exit
PB: predicated region body
PF: predicated region fallthrough
CT: control target
= control target key end

     0   :  { %8 = vsyncpa [#allocation3], 0  ;;  %s1077_s0 = inlined_call_operand.hbm [shape: f32[8,256], index: 0, kind: input, shape index: {}]   ;;  %s1078_s1 = inlined_call_operand.hbm [shape: f32[8,1], index: 1, kind: input, shape index: {}]   ;;  %s1079_s2 = inlined_call_operand.hbm [shape: f32[8,1], index: 2, kind: input, shape index: {}]   ;;  %s1080_s3 = inlined_call_operand.hbm [shape: f32[8,256], index: 3, kind: output, shape index: {}]  }
   0x1   :  { %10 = vsyncpa [#allocation3 + $0x1], 0 }
   0x2   :  { %11 = vsyncpa [#allocation6], 0 }
   0x3   :  { %12 = vsyncpa [#allocation4], 0 }
   0x4   :  { %14 = vsyncpa [#allocation4 + $0x1], 0  ;;  %s809_s12 = smov 0   ;;  %s811_s13 = smov 0  }
   0x5   :  { %s813_s14 = smov 0   ;;  %s815_s15 = smov 0  }
   0x6   :  { %s817_s16 = smov 0   ;;  %s819_s17 = smov 0  }
   0x7 LB: > { %s484_s18 = sadd.s32 4294967295, %s776_s17   ;;  %s485_s19 = sadd.s32 4294967294, %s776_s17   ;;  %s776_s17 = sphi %s819_s17, %s20_s17   ;;  %s772_s16 = sphi %s817_s16, %s1103_s16   ;;  %s768_s15 = sphi %s815_s15, %s1102_s15   ;;  %s764_s14 = sphi %s813_s14, %s1101_s14   ;;  %s760_s13 = sphi %s811_s13, %s1100_s13   ;;  %s756_s12 = sphi %s809_s12, %s1099_s12  }
   0x8   : > { %p54_p0 = scmp.ne.s32.totalorder %s760_s13, %s756_s12  ;;  %p843_p1 = scmp.eq.s32.totalorder %s484_s18, 0 }
   0x9   : > { %p847_p2 = scmp.eq.s32.totalorder %s484_s18, 1  ;;  %p138_p3 = scmp.eq.s32.totalorder %s485_s19, 1 }
   0xa   : > { %s1085_s20 = scalar_select %p843_p1, 1, 0 }
   0xb   : > { %s1086_s21 = scalar_select %p847_p2, 1, 0 }
   0xc   : > { %p853_p4 = por %p843_p1, %p54_p0  ;;  %p486_p5 = scmp.ge.s32.totalorder %s776_s17, 1 }
   0xd   : > { %p858_p6 = por %p138_p3, %p54_p0  ;;  %p145_p7 = scmp.lt.s32.totalorder %s776_s17, 3 }
   0xe   : > { %s1087_s22 = scalar_select %p853_p4, 1, 0 }
   0xf   : > { %s1088_s23 = scalar_select %p858_p6, 1, 0 }
  0x10   : > { %p863_p8 = pnand %p486_p5, %p145_p7  ;;  %s778_s25 = smov [#allocation5]  }
  0x11   : > { %s160_s26 = sshll.u32 %s778_s25, 4  ;;  %s779_s27 = smov [#allocation7]   ;;  %s161_s26 = int_to_ptr.vmem [resolvable:$true] %s160_s26 }
  0x12   : > { %s1089_s24 = scalar_select %p863_p8, 1, 0 }
  0x13   : > { %p521_p10 = pneg %p863_p8  ;;  %s173_s28 = sshll.u32 %s779_s27, 4  ;;  %s876_s28 = int_to_ptr.vmem [resolvable:$true] %s173_s28 }
  0x14   : > { %s604_s5 = scalar_lea.hbm %s1078_s1, 128 }
  0x15   : > { %p872_p11 = pnand %p521_p10, %p843_p1  ;;  %p605_p12 = scmp.ne.s32.totalorder %s1078_s1, %s604_s5 }
  0x16   : > { %p611_p5 = scmp.lt.u32.totalorder %s604_s5, %s1078_s1 }
  0x17   : > { %p606_p13 = pneg %p872_p11 }
  0x19   : > { %p607_p0 = pnand %p606_p13, %p605_p12 }
  0x1b   : > { %p608_p3 = pneg %p607_p0 }
  0x1d   : > { %p613_p7 = pnand %p611_p5, %p608_p3 }
  0x1f   : > { %616 = shalt.err (!%p613_p7)
}
  0x20   : > { %s617_s10 = scalar_lea.vmem %s161_s26, 128  ;;  %p625_p1 = scmp.lt.s32.totalorder %s161_s26, %s161_s26 }
  0x21   : > { %p618_p10 = scmp.ne.s32.totalorder %s161_s26, %s617_s10  ;;  %p626_p4 = scmp.lt.s32.totalorder %s617_s10, %s617_s10 }
  0x23   : > { %p620_p9 = pnand %p618_p10, %p606_p13  ;;  %p627_p8 = por %p626_p4, %p625_p1 }
  0x25   : > { %p621_p6 = pneg %p620_p9 }
  0x27   : > { %p628_p2 = pnand %p627_p8, %p621_p6 }
  0x29   : > { %631 = shalt.err (!%p628_p2)
}
  0x2a   : > { %524 = dma.hbm_to_vmem [thread:$0]  (!%p872_p11), %s1078_s1, 128, %s161_s26, [#allocation6]  }
  0x2b   : > { %s632_s27 = scalar_lea.hbm %s1079_s2, 128 }
  0x2c   : > { %p633_p9 = scmp.ne.s32.totalorder %s1079_s2, %s632_s27  ;;  %p639_p2 = scmp.lt.u32.totalorder %s632_s27, %s1079_s2 }
  0x2e   : > { %p635_p1 = pnand %p633_p9, %p606_p13 }
  0x30   : > { %p636_p4 = pneg %p635_p1 }
  0x32   : > { %p641_p6 = pnand %p639_p2, %p636_p4 }
  0x34   : > { %644 = shalt.err (!%p641_p6)
}
  0x35   : > { %s645_s26 = scalar_lea.vmem %s876_s28, 128  ;;  %p653_p3 = scmp.lt.s32.totalorder %s876_s28, %s876_s28 }
  0x36   : > { %p646_p8 = scmp.ne.s32.totalorder %s876_s28, %s645_s26  ;;  %p654_p5 = scmp.lt.s32.totalorder %s645_s26, %s645_s26 }
  0x38   : > { %p648_p12 = pnand %p646_p8, %p606_p13  ;;  %p655_p7 = por %p654_p5, %p653_p3 }
  0x3a   : > { %p649_p0 = pneg %p648_p12 }
  0x3c   : > { %p656_p10 = pnand %p655_p7, %p649_p0 }
  0x3e   : > { %659 = shalt.err (!%p656_p10)
}
  0x3f   : > { %527 = dma.hbm_to_vmem [thread:$0]  (!%p872_p11), %s1079_s2, 128, %s876_s28, [#allocation6]  }
  0x40   : > { %s29_s9 = sadd.s32 1, %s772_s16  ;;  %s41_s10 = sadd.s32 1, %s764_s14 }
  0x41   : > { %p30_p13 = scmp.ge.s32.totalorder %s29_s9, 2  ;;  %p48_p9 = scmp.ne.s32.totalorder %s764_s14, %s760_s13 }
  0x42   : > { %p49_p1 = scmp.eq.s32.totalorder %s776_s17, 0  ;;  %p538_p4 = scmp.lt.s32.totalorder %s776_s17, 2 }
  0x43   : > { %s1105_s9 = smov (%p30_p13, %s29_s9), 0  ;;  %p1091_p6 = scmp.ne.s32.totalorder %s1086_s21, 0 }
  0x44   : > { %p50_p2 = por %p49_p1, %p48_p9  ;;  %s37_s11 = ssub.s32 %s772_s16, %s1105_s9 }
  0x45   : > { %p935_p8 = por %p1091_p6, %p48_p9  ;;  %s184_s18 = sand.u32 1, %s764_s14  }
  0x46   : > { %p39_p12 = scmp.eq.s32.totalorder %s37_s11, 0  ;;  %s490_s28 = sshll.u32 %s184_s18, 3 }
  0x47   : > { %s491_s19 = sshll.u32 %s772_s16, 7  ;;  %s188_s21 = scalar_lea.vmem [#allocation2], %s490_s28 }
  0x48   : > { %s944_s25 = scalar_select %p39_p12, %s764_s14, %s41_s10  }
  0x49   : > { %s949_s4 = scalar_lea.hbm %s1077_s0, %s491_s19  ;;  %s197_s5 = sshll.u32 %s188_s21, 4  ;;  %s957_s5 = int_to_ptr.vmem [resolvable:$true] %s197_s5 }
  0x4a   : > { %p953_p11 = pnand %p538_p4, %p50_p2  ;;  %s185_s26 = scalar_lea.sflag [#allocation3], %s184_s18 }
  0x4b   : > { %s660_s7 = scalar_lea.hbm %s949_s4, 128  ;;  %s665_s11 = scalar_lea.hbm %s1077_s0, 256 }
  0x4c   : > { %p661_p0 = scmp.ne.s32.totalorder %s949_s4, %s660_s7  ;;  %p662_p3 = pneg %p953_p11 }
  0x4d   : > { %p666_p10 = scmp.lt.u32.totalorder %s949_s4, %s1077_s0  ;;  %p667_p13 = scmp.lt.u32.totalorder %s665_s11, %s660_s7 }
  0x4e   : > { %p663_p5 = pnand %p662_p3, %p661_p0  ;;  %p669_p1 = scmp.lt.u32.totalorder %s660_s7, %s949_s4 }
  0x4f   : > { %p668_p9 = por %p667_p13, %p666_p10 }
  0x50   : > { %p664_p7 = pneg %p663_p5 }
  0x51   : > { %p670_p4 = por %p669_p1, %p668_p9 }
  0x53   : > { %p671_p2 = pnand %p670_p4, %p664_p7 }
  0x55   : > { %674 = shalt.err (!%p671_p2)
}
  0x56   : > { %s675_s18 = scalar_lea.vmem %s957_s5, 128  ;;  %s780_s27 = smov [#allocation2]  }
  0x57   : > { %p676_p6 = scmp.ne.s32.totalorder %s957_s5, %s675_s18  ;;  %s680_s30 = sshll.u32 %s780_s27, 4  ;;  %s681_s30 = int_to_ptr.vmem [resolvable:$false] %s680_s30 }
  0x58   : > { %s682_s21 = scalar_lea.vmem %s681_s30, 256  ;;  %p683_p5 = scmp.lt.s32.totalorder %s957_s5, %s681_s30 }
  0x59   : > { %p678_p12 = pnand %p676_p6, %p662_p3  ;;  %p684_p10 = scmp.lt.s32.totalorder %s682_s21, %s675_s18 }
  0x5b   : > { %p679_p0 = pneg %p678_p12  ;;  %p685_p13 = por %p684_p10, %p683_p5 }
  0x5d   : > { %p686_p9 = pnand %p685_p13, %p679_p0 }
  0x5f   : > { %689 = shalt.err (!%p686_p9)
}
  0x60   : > { %531 = dma.hbm_to_vmem [thread:$0]  (!%p953_p11), %s949_s4, 128, %s957_s5, %s185_s26  }
  0x61   : > { %p1094_p7 = scmp.ne.s32.totalorder %s1089_s24, 0 }
  0x62   : > { %s987_s7 = sand.u32 (!%p1094_p7), 1, %s760_s13   ;;  %p1095_p3 = scmp.ne.s32.totalorder (!%p1094_p7), %s1087_s22, 0 }
  0x63   : > { %206 = sbr.rel (%p1094_p7) target bundleno = 341 (0x155), region = 32  ;;  %s493_s8 = sshll.u32 (!%p1094_p7), %s987_s7, 3 }
  0x64   : > { %s209_s10 = scalar_lea.sflag (!%p1094_p7), [#allocation3], %s987_s7  ;;  %s212_s11 = scalar_lea.vmem (!%p1094_p7), [#allocation2], %s493_s8 }
  0x6a   : > { %743 = dma.done.wait (%p1095_p3), %s209_s10, 128  }
  0x6b   : > { %745 = vsyncadd (%p1095_p3), %s209_s10, 4294967168  ;;  %p1096_p11 = scmp.ne.s32.totalorder %s1085_s20, 0 }
  0x6d   : > { %747 = dma.done.wait (%p1096_p11), [#allocation6], 256  }
  0x6e   : > { %749 = vsyncadd (%p1096_p11), [#allocation6], 4294967040  ;;  %v781_v0 = vmov 0   ;;  %v244_v1 = vld [vmem:[#allocation5] sm:$0xff]  ;;  %v245_v2 = vld [vmem:[#allocation7] sm:$0xff]  ;;  %s502_s20 = sshll.u32 %s768_s15, 7 }
  0x6f   : > { %599 = vset.pattern.permute.xlu0 %v781_v0  ;;  %v243_v4 = vld [vmem:[%s212_s11] sm:$0xff]  ;;  %v782_v18 = vmov 683565275   ;;  %v783_v20 = vmov 2475754826   ;;  %s242_s22 = scalar_lea.vmem [#allocation8], %s493_s8  ;;  %s1028_s6 = scalar_lea.hbm %s1080_s3, %s502_s20 }
  0x70   : > { %248 = vperm.xlu0 %599, %v244_v1   ;;  %v784_v23 = vmov 2131351028   ;;  %v785_v26 = vmov 2102212464   ;;  %v786_v29 = vmov 920167782  }
  0x71   : > { %v787_v32 = vmov 1326507024   ;;  %s379_s24 = sshll.u32 %s242_s22, 4  ;;  %s364_s15 = scalar_lea.sflag [#allocation4], %s987_s7  ;;  %s1030_s24 = int_to_ptr.vmem [resolvable:$true] %s379_s24 }
  0x72   : > { %s690_s26 = scalar_lea.vmem %s1030_s24, 128  ;;  %s788_s28 = smov [#allocation8]  }
  0x73   : > { %p691_p1 = scmp.ne.s32.totalorder %s1030_s24, %s690_s26  ;;  %s694_s19 = sshll.u32 %s788_s28, 4  ;;  %s695_s19 = int_to_ptr.vmem [resolvable:$false] %s694_s19 }
  0x74   : > { %254 = vperm.xlu0 %599, %v245_v2   ;;  %s696_s18 = scalar_lea.vmem %s695_s19, 256  ;;  %p697_p6 = scmp.lt.s32.totalorder %s1030_s24, %s695_s19 }
  0x75   : > { %p692_p4 = pnand %p691_p1, %p935_p8  ;;  %p698_p12 = scmp.lt.s32.totalorder %s696_s18, %s690_s26 }
  0x77   : > { %p693_p2 = pneg %p692_p4  ;;  %p699_p0 = por %p698_p12, %p697_p6 }
  0x79   : > { %p700_p5 = pnand %p699_p0, %p693_p2 }
  0xef   : > { %v249_v3 = vpop.permute.xlu0 %248 }
  0xf0   : > { %v251_v5 = vmul.f32 %v249_v3, %v243_v4 }
  0xf3   : > { %v255_v6 = vpop.permute.xlu0 %254 }
  0xf4   : > { %v1001_v7 = vadd.f32 %v255_v6, %v251_v5 }
  0xf6   : > { %v261_v8 = vand.u32 2139095040, %v1001_v7  ;;  %v258_v12 = vand.u32 2147483647, %v1001_v7  ;;  %vm260_vm7 = vcmp.lt.s32.totalorder %v1001_v7, 0  ;;  %vm350_vm12 = vweird.f32 %v1001_v7 }
  0xf8   : > { %v262_v9 = vshrl.u32 %v261_v8, 23  ;;  %v265_v15 = vand.u32 8388607, %v258_v12  ;;  %vm259_vm8 = vcmp.le.f32.partialorder %v258_v12, 0.7853982 }
  0xfa   : > { %v497_v10 = vadd.s32 4294967169, %v262_v9  ;;  %v266_v34 = vor.u32 8388608, %v265_v15 }
  0xfc   : > { %v268_v11 = vadd.s32 1, %v497_v10  ;;  %v306_v48 = vshll.u32 %v266_v34, 8 }
  0xfe   : > { %vm269_vm0 = vcmp.gt.s32.totalorder %v268_v11, 0 }
  0xff   : > { %v270_v13 = vsel %vm269_vm0, %v268_v11, 0 }
 0x100   : > { %v272_v14 = vand.u32 31, %v270_v13  ;;  %v271_v17 = vshrl.u32 %v270_v13, 5 }
 0x102   : > { %v273_v16 = vsub.s32 32, %v272_v14  ;;  %v275_v19 = vshll.u32 %v782_v18, %v272_v14  ;;  %v278_v21 = vshll.u32 %v783_v20, %v272_v14  ;;  %v281_v25 = vshll.u32 %v784_v23, %v272_v14 }
 0x103   : > { %v284_v28 = vshll.u32 %v785_v26, %v272_v14  ;;  %v287_v31 = vshll.u32 %v786_v29, %v272_v14  ;;  %vm290_vm1 = vcmp.lt.s32.totalorder %v271_v17, 1  ;;  %vm293_vm2 = vcmp.lt.s32.totalorder %v271_v17, 4 }
 0x104   : > { %v276_v22 = vshrl.u32 %v783_v20, %v273_v16  ;;  %v279_v24 = vshrl.u32 %v784_v23, %v273_v16  ;;  %v282_v27 = vshrl.u32 %v785_v26, %v273_v16  ;;  %v285_v30 = vshrl.u32 %v786_v29, %v273_v16 }
 0x105   : > { %v288_v33 = vshrl.u32 %v787_v32, %v273_v16  ;;  %v274_v43 = vshrl.u32 %v782_v18, %v273_v16  ;;  %vm292_vm3 = vcmp.lt.s32.totalorder %v271_v17, 3  ;;  %vm291_vm4 = vcmp.lt.s32.totalorder %v271_v17, 2 }
 0x106   : > { %v277_v35 = vor.u32 %v276_v22, %v275_v19  ;;  %v280_v36 = vor.u32 %v279_v24, %v278_v21  ;;  %v283_v37 = vor.u32 %v282_v27, %v281_v25  ;;  %v286_v38 = vor.u32 %v285_v30, %v284_v28 }
 0x107   : > { %v289_v39 = vor.u32 %v288_v33, %v287_v31 }
 0x108   : > { %v295_v40 = vsel %vm293_vm2, %v283_v37, 2102212464  ;;  %v298_v41 = vsel %vm290_vm1, %v277_v35, %v280_v36  ;;  %v302_v42 = vsel %vm290_vm1, %v280_v36, %v283_v37  ;;  %v299_v44 = vsel %vm293_vm2, %v286_v38, 920167782 }
 0x109   : > { %v303_v45 = vsel %vm293_vm2, %v289_v39, 1326507024  ;;  %v300_v46 = vsel %vm292_vm3, %v283_v37, %v299_v44  ;;  %v294_v49 = vsel %vm290_vm1, %v274_v43, %v277_v35  ;;  %v296_v50 = vsel %vm292_vm3, %v280_v36, %v295_v40 }
 0x10a   : > { %v304_v47 = vsel %vm292_vm3, %v286_v38, %v303_v45  ;;  %v301_v51 = vsel %vm291_vm4, %v298_v41, %v300_v46  ;;  %v297_v57 = vsel %vm291_vm4, %v294_v49, %v296_v50 }
 0x10b   : > { %v305_v52 = vsel %vm291_vm4, %v302_v42, %v304_v47  ;;  %v1010_v55 = vmul.u32.u64.low %v306_v48, %v301_v51  ;;  %v1011_v56 = vmul.u32.u64.high %v306_v48, %v301_v51, %v1010_v55  ;;  %v313_v59 = vmul.u32 %v306_v48, %v297_v57 }
 0x10c   : > { %v1007_v53 = vmul.u32.u64.low %v306_v48, %v305_v52  ;;  %v1008_v54 = vmul.u32.u64.high %v306_v48, %v305_v52, %v1007_v53 }
 0x10d   : > { %v316_v58 = vadd.s32 1, %v1011_v56 }
 0x10e   : > { %vm315_vm5 = vc.u32 %v1008_v54, %v1010_v55  ;;  %v314_v8 = vadd.s32 %v1010_v55, %v1008_v54 }
 0x10f   : > { %v317_v60 = vsel %vm315_vm5, %v316_v58, %v1011_v56 }
 0x110   : > { %v318_v61 = vadd.s32 %v317_v60, %v313_v59 }
 0x112   : > { %v319_v62 = vadd.s32 536870912, %v318_v61 }
 0x114   : > { %v320_v63 = vshrl.u32 %v319_v62, 30 }
 0x116   : > { %v321_v0 = vshll.u32 %v320_v63, 30  ;;  %v344_v23 = vsub.s32 4, %v320_v63 }
 0x118   : > { %v322_v1 = vsub.s32 %v318_v61, %v321_v0  ;;  %v345_v25 = vsel %vm260_vm7, %v344_v23, %v320_v63 }
 0x119   : > { %v347_v26 = vsel %vm259_vm8, 0, %v345_v25 }
 0x11a   : > { %v324_v2 = vsub.s32 0, %v322_v1  ;;  %v351_v27 = vand.u32 3, %v347_v26 }
 0x11c   : > { %v498_v3 = vmin.u32 %v324_v2, %v322_v1  ;;  %vm356_vm9 = vcmp.eq.s32.totalorder %v351_v27, 2  ;;  %vm353_vm10 = vcmp.eq.s32.totalorder %v351_v27, 0  ;;  %vm352_vm11 = vcmp.lt.s32.totalorder %v351_v27, 2 }
 0x11e   : > { %v326_v4 = vclz %v498_v3 }
 0x120   : > { %v499_v5 = vadd.s32 4294967294, %v326_v4 }
 0x122   : > { %vm500_vm6 = vcmp.lt.s32.totalorder %v499_v5, 0 }
 0x123   : > { %v329_v6 = vsel %vm500_vm6, 0, %v499_v5 }
 0x124   : > { %v330_v9 = vsub.s32 32, %v329_v6  ;;  %v334_v10 = vsub.s32 4294967266, %v329_v6  ;;  %v331_v11 = vshll.u32 %v322_v1, %v329_v6 }
 0x126   : > { %v332_v13 = vshrl.u32 %v314_v8, %v330_v9  ;;  %v335_v14 = vadd.s32 127, %v334_v10 }
 0x128   : > { %v333_v15 = vor.u32 %v332_v13, %v331_v11  ;;  %v336_v16 = vshll.u32 %v335_v14, 23 }
 0x12a   : > { %v337_v17 = vor.u32 4788187, %v336_v16  ;;  %v340_v19 = vcvt.s32.f32 %v333_v15 }
 0x12c   : > { %v338_v18 = vand.u32 2147483647, %v337_v17 }
 0x12e   : > { %v341_v20 = vmul.f32 %v340_v19, %v338_v18 }
 0x130   : > { %v342_v21 = vxor.u32 2147483648, %v341_v20 }
 0x132   : > { %v343_v22 = vsel %vm260_vm7, %v342_v21, %v341_v20 }
 0x133   : > { %v346_v24 = vsel %vm259_vm8, %v1001_v7, %v343_v22 }
 0x134   : > { %600 = vcosq.f32 %v346_v24 }
 0x135   : > { %602 = vsinq.f32 %v346_v24 }
 0x13e   : > { %v601_v28 = vpop.eup %600 }
 0x13f   : > { %v603_v29 = vpop.eup %602  ;;  %v357_v30 = vxor.u32 2147483648, %v601_v28 }
 0x140   : > { %v354_v31 = vxor.u32 2147483648, %v603_v29 }
 0x141   : > { %v358_v32 = vsel %vm356_vm9, %v357_v30, %v603_v29 }
 0x142   : > { %v355_v12 = vsel %vm353_vm10, %v601_v28, %v354_v31 }
 0x143   : > { %v359_v33 = vsel %vm352_vm11, %v355_v12, %v358_v32 }
 0x144   : > { %v360_v34 = vsel %vm350_vm12, nan, %v359_v33 }
 0x145   : > { %v361_v35 = vmul.f32 1.4142135, %v360_v34 }
 0x147   : > { %362 = vst [vmem:[%s242_s22] sm:$0xff] %v361_v35 }
 0x148   : > { %703 = shalt.err (!%p700_p5)
}
 0x149   : > { %s704_s27 = scalar_lea.hbm %s1028_s6, 128  ;;  %s708_s7 = scalar_lea.hbm %s1080_s3, 256 }
 0x14a   : > { %p705_p10 = scmp.ne.s32.totalorder %s1028_s6, %s704_s27  ;;  %p709_p7 = scmp.lt.u32.totalorder %s1028_s6, %s1080_s3 }
 0x14b   : > { %p710_p3 = scmp.lt.u32.totalorder %s708_s7, %s704_s27  ;;  %p712_p1 = scmp.lt.u32.totalorder %s704_s27, %s1028_s6 }
 0x14c   : > { %p706_p13 = pnand %p705_p10, %p935_p8 }
 0x14d   : > { %p711_p11 = por %p710_p3, %p709_p7 }
 0x14e   : > { %p707_p9 = pneg %p706_p13 }
 0x14f   : > { %p713_p4 = por %p712_p1, %p711_p11 }
 0x151   : > { %p714_p2 = pnand %p713_p4, %p707_p9 }
 0x153   : > { %717 = shalt.err (!%p714_p2)
}
 0x154   : > { %519 = dma.vmem_to_hbm [thread:$0]  (%p935_p8), %s1030_s24, 128, %s1028_s6, %s364_s15  }
 0x155 PF: > { %s391_s11 = sand.u32 1, %s756_s12   ;;  %p1097_p6 = scmp.ne.s32.totalorder %s1088_s23, 0 }
 0x156   : > { %p1098_p12 = scmp.ge.s32.totalorder %s776_s17, 2  ;;  %s392_s20 = scalar_lea.sflag [#allocation4], %s391_s11 }
 0x158   : > { %p533_p0 = pnand %p1098_p12, %p1097_p6 }
 0x15a   : > { %751 = dma.done.wait (!%p533_p0), %s392_s20, 128  }
 0x15b   : > { %753 = vsyncadd (!%p533_p0), %s392_s20, 4294967168  ;;  %s20_s17 = sadd.s32 1, %s776_s17   ;;  %s1099_s12 = smov %s760_s13 }
 0x15c   : > { %p17_p5 = scmp.ge.s32.totalorder %s20_s17, 4   ;;  %s1100_s13 = smov %s764_s14 }
 0x15d   : > { %s1101_s14 = smov %s944_s25  ;;  %s1102_s15 = smov %s772_s16 }
 0x15e   : > { %s1103_s16 = smov %s1105_s9  ;;  %19 = sbr.rel (!%p17_p5) target bundleno = 7 (0x7), region = 87 }
 0x165   :  { %397 = vsyncpa [#allocation3], 1 }
 0x166   :  { %399 = vsyncpa [#allocation3 + $0x1], 1 }
 0x167   :  { %400 = vsyncpa [#allocation6], 1 }
 0x168   :  { %401 = vsyncpa [#allocation4], 1 }
 0x169   :  { %403 = vsyncpa [#allocation4 + $0x1], 1 }

</bundles_post_ra>
